<compile_context>
chip_gen: v6e
topology: v6e:2x2x1
jax: 0.10.0
libtpu: 0.0.40
codegen_flags: <defaults>
</compile_context>

<pallas_src>
import functools

import numpy as np
import jax
import jax.numpy as jnp
from jax import lax
from jax.experimental import pallas as pl
from jax.experimental.pallas import tpu as pltpu


def _resblock2_kernel(x_ref, w1_ref, b1_ref, w2_ref, b2_ref, o_ref, xpad_ref,
                      *, res_scale, channels):
    # x_ref   : (H, W*C)             lane-dense input block (batch squeezed)
    # w*_ref  : (K, Kdim, W*C) bf16  banded conv weights (dx shifts baked in)
    # b*_ref  : (1, W*C)  f32        per-channel bias tiled across W
    # o_ref   : (H, W*C)             lane-dense output block
    # xpad_ref: (H+2p, Kdim) f32     zero-haloed scratch, Kdim >= (W+2p)*C
    f32 = jnp.float32
    bf16 = jnp.bfloat16

    K = w1_ref.shape[0]
    p = K // 2
    H, WC = o_ref.shape
    C = channels
    pC = p * C
    Kdim = xpad_ref.shape[1]

    # --- zero ONLY the halo (top/bottom rows, left/right cols + lane padding);
    #     the (H, WC) interior is fully overwritten below, so no full memset ---
    xpad_ref[pl.ds(0, p), :] = jnp.zeros((p, Kdim), f32)
    xpad_ref[pl.ds(p + H, p), :] = jnp.zeros((p, Kdim), f32)
    xpad_ref[pl.ds(p, H), pl.ds(0, pC)] = jnp.zeros((H, pC), f32)
    xpad_ref[pl.ds(p, H), pl.ds(pC + WC, Kdim - pC - WC)] = jnp.zeros(
        (H, Kdim - pC - WC), f32)

    # --- stage x into the interior; the zero halo IS Conv2d's zero padding ---
    xpad_ref[pl.ds(p, H), pl.ds(pC, WC)] = x_ref[...].astype(f32)

    def conv(w_ref, b_ref):
        # out[y, x*C+co] = b[co] + sum_dy xpad[y+dy, :] @ band[dy]
        # with band[dy][(x+dx)*C + ci, x*C + co] = w[dy, dx, ci, co]:
        # lane-dense matmuls, no per-tap slice/reshape relayouts in-kernel.
        acc = jnp.broadcast_to(b_ref[...], (H, WC))
        for dy in range(K):            # static unroll; contiguous acc chain
            band = xpad_ref[pl.ds(dy, H), :].astype(bf16)
            acc = acc + jnp.dot(band, w_ref[dy], preferred_element_type=f32)
        return acc

    # conv1 + bias + ReLU, written back into the SAME padded scratch interior
    # (the zero halo is preserved, i.e. exactly PyTorch's zero padding of the
    # H x W intermediate before conv2).
    h1 = jnp.maximum(conv(w1_ref, b1_ref), 0.0)
    xpad_ref[pl.ds(p, H), pl.ds(pC, WC)] = h1

    # conv2 + bias, scale by res_scale, add the residual (fresh lane-dense
    # load of x; x is not kept live across the convs).
    h2 = conv(w2_ref, b2_ref)
    o_ref[...] = (h2 * res_scale + x_ref[...].astype(f32)).astype(o_ref.dtype)


def _banded_weights(w_hwio, width, lane_pad):
    """HWIO (K, K, Cin, Cout) -> (K, lane_pad, W*Cout) bf16 banded matrices.

    band[dy][(x+dx)*Cin + ci, x*Cout + co] = w[dy, dx, ci, co]; rows beyond
    (W+2p)*Cin are zero (lane padding of the contraction dim to a 128 multiple).
    """
    K = w_hwio.shape[0]
    cin, cout = w_hwio.shape[2], w_hwio.shape[3]
    p = K // 2
    wp = width + 2 * p
    sel = np.zeros((K, wp, width), dtype=np.float32)
    for dx in range(K):
        sel[dx, dx + np.arange(width), np.arange(width)] = 1.0
    band = jnp.einsum('djx,ydio->yjixo', jnp.asarray(sel),
                      w_hwio.astype(jnp.float32))
    band = band.reshape(K, wp * cin, width * cout)
    if lane_pad > wp * cin:
        band = jnp.pad(band, ((0, 0), (0, lane_pad - wp * cin), (0, 0)))
    return band.astype(jnp.bfloat16)


def resblock2_pallas(x_nchw, w1_hwio, b1, w2_hwio, b2, *, res_scale=1.0):
    """ResBlock_2.forward: conv2(relu(conv1(x))) * res_scale + x  (NCHW in/out)."""
    N, C, H, W = x_nchw.shape
    K = w1_hwio.shape[0]
    p = K // 2
    WC = W * C
    WpC = (W + 2 * p) * C
    Kdim = -(-WpC // 128) * 128          # pad contraction dim to a lane multiple
    Hp = H + 2 * p

    # TODO(synk): keep activations in this packed (N, H, W*C) layout across the
    # whole network to avoid paying these full-tensor transposes per block.
    x_flat = jnp.transpose(x_nchw, (0, 2, 3, 1)).reshape(N, H, WC)

    wb1 = _banded_weights(w1_hwio, W, Kdim)
    wb2 = _banded_weights(w2_hwio, W, Kdim)
    b1_t = jnp.tile(b1.astype(jnp.float32), W).reshape(1, WC)
    b2_t = jnp.tile(b2.astype(jnp.float32), W).reshape(1, WC)

    # NOTE: res_scale is a compile-time constant (distinct values recompile);
    # pass it through SMEM if it must vary at runtime.
    kernel = functools.partial(_resblock2_kernel,
                               res_scale=float(res_scale), channels=C)

    out_flat = pl.pallas_call(
        kernel,
        out_shape=jax.ShapeDtypeStruct((N, H, WC), x_nchw.dtype),
        grid_spec=pltpu.PrefetchScalarGridSpec(
            num_scalar_prefetch=0,
            grid=(N,),
            in_specs=[
                pl.BlockSpec((None, H, WC), lambda n: (n, 0, 0)),   # x (lane-dense)
                pl.BlockSpec((K, Kdim, WC), lambda n: (0, 0, 0)),   # banded w1 bf16
                pl.BlockSpec((1, WC), lambda n: (0, 0)),            # b1 (tiled)
                pl.BlockSpec((K, Kdim, WC), lambda n: (0, 0, 0)),   # banded w2 bf16
                pl.BlockSpec((1, WC), lambda n: (0, 0)),            # b2 (tiled)
            ],
            out_specs=pl.BlockSpec((None, H, WC), lambda n: (n, 0, 0)),
            scratch_shapes=[
                pltpu.VMEM((Hp, Kdim), jnp.float32),   # single zero-haloed scratch
            ],
        ),
        compiler_params=pltpu.CompilerParams(
            dimension_semantics=("parallel",)),        # batch across TCs (v7x)
    )(x_flat, wb1, b1_t, wb2, b2_t)

    return jnp.transpose(out_flat.reshape(N, H, W, C), (0, 3, 1, 2))


def resblock2_ref(x_nchw, w1_hwio, b1, w2_hwio, b2, *, res_scale=1.0):
    """Pure-JAX reference mirroring the PyTorch forward (NCHW, f32)."""
    w1_oihw = jnp.transpose(w1_hwio, (3, 2, 0, 1))
    w2_oihw = jnp.transpose(w2_hwio, (3, 2, 0, 1))
    dn = ('NCHW', 'OIHW', 'NCHW')
    y = lax.conv_general_dilated(x_nchw, w1_oihw, (1, 1), 'SAME',
                                 dimension_numbers=dn) + b1[None, :, None, None]
    y = jnp.maximum(y, 0.0)
    y = lax.conv_general_dilated(y, w2_oihw, (1, 1), 'SAME',
                                 dimension_numbers=dn) + b2[None, :, None, None]
    return y * res_scale + x_nchw


if __name__ == "__main__":
    # Small shapes consistent with the module: n_feats channels, 3x3 convs.
    # W * C = 128 keeps the activation layout exactly one lane-dense vreg row.
    N, C, H, W, K = 2, 8, 16, 16, 3
    res_scale = 0.1

    key = jax.random.PRNGKey(0)
    kx, k1, k2, kb1, kb2 = jax.random.split(key, 5)

    x = jax.random.normal(kx, (N, C, H, W), dtype=jnp.float32)

    # Deterministic init, ~PyTorch Conv2d default scale: U(-1/sqrt(fan_in), +).
    fan_in = C * K * K
    bound = 1.0 / (fan_in ** 0.5)
    w1 = jax.random.uniform(k1, (K, K, C, C), jnp.float32, -bound, bound)  # HWIO
    w2 = jax.random.uniform(k2, (K, K, C, C), jnp.float32, -bound, bound)
    b1 = jax.random.uniform(kb1, (C,), jnp.float32, -bound, bound)
    b2 = jax.random.uniform(kb2, (C,), jnp.float32, -bound, bound)

    out = resblock2_pallas(x, w1, b1, w2, b2, res_scale=res_scale)
    out = jax.block_until_ready(out)

    ref = resblock2_ref(x, w1, b1, w2, b2, res_scale=res_scale)
    max_err = float(jnp.max(jnp.abs(out - ref)))
    # Tolerance accounts for bf16 MXU operands (f32 accumulation).
    assert jnp.allclose(out, ref, atol=2e-2, rtol=2e-2), f"max_err={max_err}"

    print("KERNEL_OK")
</pallas_src>

<mosaic_0001>
module attributes {stable_mosaic.version = 11 : i64} {
  func.func @_resblock2_kernel(%arg0: i32, %arg1: memref<1x16x128xf32, #tpu.memory_space<vmem>>, %arg2: memref<3x256x128xbf16, #tpu.memory_space<vmem>>, %arg3: memref<1x128xf32, #tpu.memory_space<vmem>>, %arg4: memref<3x256x128xbf16, #tpu.memory_space<vmem>>, %arg5: memref<1x128xf32, #tpu.memory_space<vmem>>, %arg6: memref<1x16x128xf32, #tpu.memory_space<vmem>>, %arg7: memref<18x256xf32, #tpu.memory_space<vmem>>) attributes {dimension_semantics = [#tpu.dimension_semantics<parallel>], iteration_bounds = array<i64: 2>, scalar_prefetch = 0 : i64, scratch_operands = 1 : i64, tpu.core_type = #tpu.core_type<tc>, window_params = [{transform_indices = @transform_0, window_bounds = array<i64: 1, 16, 128>}, {pipeline_mode = #tpu.pipeline_mode<synchronous>, transform_indices = @transform_1, window_bounds = array<i64: 3, 256, 128>}, {pipeline_mode = #tpu.pipeline_mode<synchronous>, transform_indices = @transform_2, window_bounds = array<i64: 1, 128>}, {pipeline_mode = #tpu.pipeline_mode<synchronous>, transform_indices = @transform_3, window_bounds = array<i64: 3, 256, 128>}, {pipeline_mode = #tpu.pipeline_mode<synchronous>, transform_indices = @transform_4, window_bounds = array<i64: 1, 128>}, {transform_indices = @transform_5, window_bounds = array<i64: 1, 16, 128>}]} {
    %cst = arith.constant 0.000000e+00 : f32
    %0 = vector.broadcast %cst : f32 to vector<1x256xf32>
    %c0 = arith.constant 0 : index
    %c0_0 = arith.constant 0 : index
    %1 = vector.load %arg7[%c0, %c0_0] : memref<18x256xf32, #tpu.memory_space<vmem>>, vector<1x256xf32>
    tpu.vector_store %arg7[%c0, %c0_0], %0 {strides = array<i32>} : memref<18x256xf32, #tpu.memory_space<vmem>>, vector<1x256xf32>,
    %cst_1 = arith.constant 0.000000e+00 : f32
    %2 = vector.broadcast %cst_1 : f32 to vector<1x256xf32>
    %c17 = arith.constant 17 : index
    %c0_2 = arith.constant 0 : index
    %3 = vector.load %arg7[%c17, %c0_2] : memref<18x256xf32, #tpu.memory_space<vmem>>, vector<1x256xf32>
    tpu.vector_store %arg7[%c17, %c0_2], %2 {strides = array<i32>} : memref<18x256xf32, #tpu.memory_space<vmem>>, vector<1x256xf32>,
    %cst_3 = arith.constant 0.000000e+00 : f32
    %4 = vector.broadcast %cst_3 : f32 to vector<16x8xf32>
    %c1 = arith.constant 1 : index
    %c0_4 = arith.constant 0 : index
    %5 = vector.load %arg7[%c1, %c0_4] : memref<18x256xf32, #tpu.memory_space<vmem>>, vector<16x8xf32>
    tpu.vector_store %arg7[%c1, %c0_4], %4 {strides = array<i32>} : memref<18x256xf32, #tpu.memory_space<vmem>>, vector<16x8xf32>,
    %cst_5 = arith.constant 0.000000e+00 : f32
    %6 = vector.broadcast %cst_5 : f32 to vector<16x120xf32>
    %c1_6 = arith.constant 1 : index
    %c136 = arith.constant 136 : index
    %7 = vector.load %arg7[%c1_6, %c136] : memref<18x256xf32, #tpu.memory_space<vmem>>, vector<16x120xf32>
    tpu.vector_store %arg7[%c1_6, %c136], %6 {strides = array<i32>} : memref<18x256xf32, #tpu.memory_space<vmem>>, vector<16x120xf32>,
    %c0_7 = arith.constant 0 : index
    %c0_8 = arith.constant 0 : index
    %c0_9 = arith.constant 0 : index
    %8 = vector.load %arg1[%c0_7, %c0_8, %c0_9] : memref<1x16x128xf32, #tpu.memory_space<vmem>>, vector<1x16x128xf32>
    %9 = vector.shape_cast %8 : vector<1x16x128xf32> to vector<16x128xf32>
    %c1_10 = arith.constant 1 : index
    %c8 = arith.constant 8 : index
    %10 = vector.load %arg7[%c1_10, %c8] : memref<18x256xf32, #tpu.memory_space<vmem>>, vector<16x128xf32>
    tpu.vector_store %arg7[%c1_10, %c8], %9 {strides = array<i32>} : memref<18x256xf32, #tpu.memory_space<vmem>>, vector<16x128xf32>,
    %c0_11 = arith.constant 0 : index
    %c0_12 = arith.constant 0 : index
    %11 = vector.load %arg3[%c0_11, %c0_12] : memref<1x128xf32, #tpu.memory_space<vmem>>, vector<1x128xf32>
    %12 = vector.shape_cast %11 : vector<1x128xf32> to vector<1x128xf32>
    %13 = vector.broadcast %12 : vector<1x128xf32> to vector<16x128xf32>
    %c0_13 = arith.constant 0 : index
    %c0_14 = arith.constant 0 : index
    %14 = vector.load %arg7[%c0_13, %c0_14] : memref<18x256xf32, #tpu.memory_space<vmem>>, vector<16x256xf32>
    %15 = arith.truncf %14 : vector<16x256xf32> to vector<16x256xbf16>
    %c0_15 = arith.constant 0 : index
    %c0_16 = arith.constant 0 : index
    %c0_17 = arith.constant 0 : index
    %16 = vector.load %arg2[%c0_15, %c0_16, %c0_17] : memref<3x256x128xbf16, #tpu.memory_space<vmem>>, vector<1x256x128xbf16>
    %17 = vector.shape_cast %16 : vector<1x256x128xbf16> to vector<256x128xbf16>
    %cst_18 = arith.constant dense<0.000000e+00> : vector<16x128xf32>
    %18 = tpu.matmul %15, %17, %cst_18 {dimension_numbers = #tpu.dot_dimension_numbers<[1], [0], [0], [1], [0, 0, 1, 1], [], []>} : vector<16x256xbf16>, vector<256x128xbf16>, vector<16x128xf32> -> vector<16x128xf32>
    %19 = arith.addf %13, %18 : vector<16x128xf32>
    %c1_19 = arith.constant 1 : index
    %c0_20 = arith.constant 0 : index
    %20 = vector.load %arg7[%c1_19, %c0_20] : memref<18x256xf32, #tpu.memory_space<vmem>>, vector<16x256xf32>
    %21 = arith.truncf %20 : vector<16x256xf32> to vector<16x256xbf16>
    %c1_21 = arith.constant 1 : index
    %c0_22 = arith.constant 0 : index
    %c0_23 = arith.constant 0 : index
    %22 = vector.load %arg2[%c1_21, %c0_22, %c0_23] : memref<3x256x128xbf16, #tpu.memory_space<vmem>>, vector<1x256x128xbf16>
    %23 = vector.shape_cast %22 : vector<1x256x128xbf16> to vector<256x128xbf16>
    %cst_24 = arith.constant dense<0.000000e+00> : vector<16x128xf32>
    %24 = tpu.matmul %21, %23, %cst_24 {dimension_numbers = #tpu.dot_dimension_numbers<[1], [0], [0], [1], [0, 0, 1, 1], [], []>} : vector<16x256xbf16>, vector<256x128xbf16>, vector<16x128xf32> -> vector<16x128xf32>
    %25 = arith.addf %19, %24 : vector<16x128xf32>
    %c2 = arith.constant 2 : index
    %c0_25 = arith.constant 0 : index
    %26 = vector.load %arg7[%c2, %c0_25] : memref<18x256xf32, #tpu.memory_space<vmem>>, vector<16x256xf32>
    %27 = arith.truncf %26 : vector<16x256xf32> to vector<16x256xbf16>
    %c2_26 = arith.constant 2 : index
    %c0_27 = arith.constant 0 : index
    %c0_28 = arith.constant 0 : index
    %28 = vector.load %arg2[%c2_26, %c0_27, %c0_28] : memref<3x256x128xbf16, #tpu.memory_space<vmem>>, vector<1x256x128xbf16>
    %29 = vector.shape_cast %28 : vector<1x256x128xbf16> to vector<256x128xbf16>
    %cst_29 = arith.constant dense<0.000000e+00> : vector<16x128xf32>
    %30 = tpu.matmul %27, %29, %cst_29 {dimension_numbers = #tpu.dot_dimension_numbers<[1], [0], [0], [1], [0, 0, 1, 1], [], []>} : vector<16x256xbf16>, vector<256x128xbf16>, vector<16x128xf32> -> vector<16x128xf32>
    %31 = arith.addf %25, %30 : vector<16x128xf32>
    %cst_30 = arith.constant 0.000000e+00 : f32
    %32 = vector.broadcast %cst_30 : f32 to vector<16x128xf32>
    %33 = arith.maximumf %31, %32 : vector<16x128xf32>
    %c1_31 = arith.constant 1 : index
    %c8_32 = arith.constant 8 : index
    %34 = vector.load %arg7[%c1_31, %c8_32] : memref<18x256xf32, #tpu.memory_space<vmem>>, vector<16x128xf32>
    tpu.vector_store %arg7[%c1_31, %c8_32], %33 {strides = array<i32>} : memref<18x256xf32, #tpu.memory_space<vmem>>, vector<16x128xf32>,
    %c0_33 = arith.constant 0 : index
    %c0_34 = arith.constant 0 : index
    %35 = vector.load %arg5[%c0_33, %c0_34] : memref<1x128xf32, #tpu.memory_space<vmem>>, vector<1x128xf32>
    %36 = vector.shape_cast %35 : vector<1x128xf32> to vector<1x128xf32>
    %37 = vector.broadcast %36 : vector<1x128xf32> to vector<16x128xf32>
    %c0_35 = arith.constant 0 : index
    %c0_36 = arith.constant 0 : index
    %38 = vector.load %arg7[%c0_35, %c0_36] : memref<18x256xf32, #tpu.memory_space<vmem>>, vector<16x256xf32>
    %39 = arith.truncf %38 : vector<16x256xf32> to vector<16x256xbf16>
    %c0_37 = arith.constant 0 : index
    %c0_38 = arith.constant 0 : index
    %c0_39 = arith.constant 0 : index
    %40 = vector.load %arg4[%c0_37, %c0_38, %c0_39] : memref<3x256x128xbf16, #tpu.memory_space<vmem>>, vector<1x256x128xbf16>
    %41 = vector.shape_cast %40 : vector<1x256x128xbf16> to vector<256x128xbf16>
    %cst_40 = arith.constant dense<0.000000e+00> : vector<16x128xf32>
    %42 = tpu.matmul %39, %41, %cst_40 {dimension_numbers = #tpu.dot_dimension_numbers<[1], [0], [0], [1], [0, 0, 1, 1], [], []>} : vector<16x256xbf16>, vector<256x128xbf16>, vector<16x128xf32> -> vector<16x128xf32>
    %43 = arith.addf %37, %42 : vector<16x128xf32>
    %c1_41 = arith.constant 1 : index
    %c0_42 = arith.constant 0 : index
    %44 = vector.load %arg7[%c1_41, %c0_42] : memref<18x256xf32, #tpu.memory_space<vmem>>, vector<16x256xf32>
    %45 = arith.truncf %44 : vector<16x256xf32> to vector<16x256xbf16>
    %c1_43 = arith.constant 1 : index
    %c0_44 = arith.constant 0 : index
    %c0_45 = arith.constant 0 : index
    %46 = vector.load %arg4[%c1_43, %c0_44, %c0_45] : memref<3x256x128xbf16, #tpu.memory_space<vmem>>, vector<1x256x128xbf16>
    %47 = vector.shape_cast %46 : vector<1x256x128xbf16> to vector<256x128xbf16>
    %cst_46 = arith.constant dense<0.000000e+00> : vector<16x128xf32>
    %48 = tpu.matmul %45, %47, %cst_46 {dimension_numbers = #tpu.dot_dimension_numbers<[1], [0], [0], [1], [0, 0, 1, 1], [], []>} : vector<16x256xbf16>, vector<256x128xbf16>, vector<16x128xf32> -> vector<16x128xf32>
    %49 = arith.addf %43, %48 : vector<16x128xf32>
    %c2_47 = arith.constant 2 : index
    %c0_48 = arith.constant 0 : index
    %50 = vector.load %arg7[%c2_47, %c0_48] : memref<18x256xf32, #tpu.memory_space<vmem>>, vector<16x256xf32>
    %51 = arith.truncf %50 : vector<16x256xf32> to vector<16x256xbf16>
    %c2_49 = arith.constant 2 : index
    %c0_50 = arith.constant 0 : index
    %c0_51 = arith.constant 0 : index
    %52 = vector.load %arg4[%c2_49, %c0_50, %c0_51] : memref<3x256x128xbf16, #tpu.memory_space<vmem>>, vector<1x256x128xbf16>
    %53 = vector.shape_cast %52 : vector<1x256x128xbf16> to vector<256x128xbf16>
    %cst_52 = arith.constant dense<0.000000e+00> : vector<16x128xf32>
    %54 = tpu.matmul %51, %53, %cst_52 {dimension_numbers = #tpu.dot_dimension_numbers<[1], [0], [0], [1], [0, 0, 1, 1], [], []>} : vector<16x256xbf16>, vector<256x128xbf16>, vector<16x128xf32> -> vector<16x128xf32>
    %55 = arith.addf %49, %54 : vector<16x128xf32>
    %cst_53 = arith.constant 1.000000e-01 : f32
    %56 = vector.broadcast %cst_53 : f32 to vector<16x128xf32>
    %57 = arith.mulf %55, %56 : vector<16x128xf32>
    %c0_54 = arith.constant 0 : index
    %c0_55 = arith.constant 0 : index
    %c0_56 = arith.constant 0 : index
    %58 = vector.load %arg1[%c0_54, %c0_55, %c0_56] : memref<1x16x128xf32, #tpu.memory_space<vmem>>, vector<1x16x128xf32>
    %59 = vector.shape_cast %58 : vector<1x16x128xf32> to vector<16x128xf32>
    %60 = arith.addf %57, %59 : vector<16x128xf32>
    %c0_57 = arith.constant 0 : index
    %c0_58 = arith.constant 0 : index
    %c0_59 = arith.constant 0 : index
    %61 = vector.load %arg6[%c0_57, %c0_58, %c0_59] : memref<1x16x128xf32, #tpu.memory_space<vmem>>, vector<1x16x128xf32>
    %62 = vector.shape_cast %61 : vector<1x16x128xf32> to vector<16x128xf32>
    %63 = vector.shape_cast %60 : vector<16x128xf32> to vector<1x16x128xf32>
    tpu.vector_store %arg6[%c0_57, %c0_58, %c0_59], %63 {strides = array<i32>} : memref<1x16x128xf32, #tpu.memory_space<vmem>>, vector<1x16x128xf32>,
    return
  }
  func.func @transform_0(%arg0: i32) -> (i32, i32, i32) {
    %c0_i32 = arith.constant 0 : i32
    %c0_i32_0 = arith.constant 0 : i32
    %c0_i32_1 = arith.constant 0 : i32
    return %arg0, %c0_i32, %c0_i32_0 : i32, i32, i32
  }
  func.func @transform_1(%arg0: i32) -> (i32, i32, i32) {
    %c0_i32 = arith.constant 0 : i32
    %c0_i32_0 = arith.constant 0 : i32
    %c0_i32_1 = arith.constant 0 : i32
    %c0_i32_2 = arith.constant 0 : i32
    return %c0_i32, %c0_i32_0, %c0_i32_1 : i32, i32, i32
  }
  func.func @transform_2(%arg0: i32) -> (i32, i32) {
    %c0_i32 = arith.constant 0 : i32
    %c0_i32_0 = arith.constant 0 : i32
    %c0_i32_1 = arith.constant 0 : i32
    return %c0_i32, %c0_i32_0 : i32, i32
  }
  func.func @transform_3(%arg0: i32) -> (i32, i32, i32) {
    %c0_i32 = arith.constant 0 : i32
    %c0_i32_0 = arith.constant 0 : i32
    %c0_i32_1 = arith.constant 0 : i32
    %c0_i32_2 = arith.constant 0 : i32
    return %c0_i32, %c0_i32_0, %c0_i32_1 : i32, i32, i32
  }
  func.func @transform_4(%arg0: i32) -> (i32, i32) {
    %c0_i32 = arith.constant 0 : i32
    %c0_i32_0 = arith.constant 0 : i32
    %c0_i32_1 = arith.constant 0 : i32
    return %c0_i32, %c0_i32_0 : i32, i32
  }
  func.func @transform_5(%arg0: i32) -> (i32, i32, i32) {
    %c0_i32 = arith.constant 0 : i32
    %c0_i32_0 = arith.constant 0 : i32
    %c0_i32_1 = arith.constant 0 : i32
    return %arg0, %c0_i32, %c0_i32_0 : i32, i32, i32
  }
}

</mosaic_0001>

<bundles_post_ra>
// kernel: tpu_custom_call.1
= control target key start
LH: loop header
LB: loop body
LE: loop exit
PB: predicated region body
PF: predicated region fallthrough
CT: control target
= control target key end

     0   :  { %10 = vsyncpa [#allocation4], 0  ;;  %s2483_s0 = inlined_call_operand.hbm [shape: f32[2,16,128], index: 0, kind: input, shape index: {}]   ;;  %s2484_s1 = inlined_call_operand.hbm [shape: bf16[3,256,128], index: 1, kind: input, shape index: {}]   ;;  %s2485_s2 = inlined_call_operand.vmem [shape: f32[1,128], index: 2, kind: input, shape index: {}]   ;;  %s2486_s3 = inlined_call_operand.hbm [shape: bf16[3,256,128], index: 3, kind: input, shape index: {}]   ;;  %s2487_s4 = inlined_call_operand.vmem [shape: f32[1,128], index: 4, kind: input, shape index: {}]   ;;  %s2488_s5 = inlined_call_operand.hbm [shape: f32[2,16,128], index: 5, kind: output, shape index: {}]  }
   0x1   :  { %12 = vsyncpa [#allocation4 + $0x1], 0 }
   0x2   :  { %13 = vsyncpa [#allocation7], 0 }
   0x3   :  { %14 = vsyncpa [#allocation5], 0 }
   0x4   :  { %16 = vsyncpa [#allocation5 + $0x1], 0  ;;  %s2234_s18 = smov 0   ;;  %s2236_s19 = smov 0  }
   0x5   :  { %s2238_s20 = smov 0   ;;  %s2240_s21 = smov 0  }
   0x6 LB: > { %s2255_s22 = sadd.s32 4294967295, %s2191_s21   ;;  %s1623_s23 = sadd.s32 4294967294, %s2191_s21   ;;  %s2191_s21 = sphi %s2240_s21, %s2510_s21   ;;  %s2187_s20 = sphi %s2238_s20, %s2509_s20   ;;  %s2183_s19 = sphi %s2236_s19, %s2508_s19   ;;  %s2179_s18 = sphi %s2234_s18, %s2507_s18  }
   0x7   : > { %p42_p0 = scmp.ne.s32.totalorder %s2183_s19, %s2179_s18  ;;  %p2489_p1 = scmp.eq.s32.totalorder %s2255_s22, 0 }
   0x8   : > { %p156_p3 = scmp.eq.s32.totalorder %s1623_s23, 1  ;;  %p1624_p5 = scmp.ge.s32.totalorder %s2191_s21, 1 }
   0x9   : > { %p2264_p4 = por %p2489_p1, %p42_p0  ;;  %p163_p7 = scmp.lt.s32.totalorder %s2191_s21, 3 }
   0xa   : > { %p2269_p6 = por %p156_p3, %p42_p0  ;;  %s2193_s27 = smov [#allocation6]  }
   0xb   : > { %s2493_s24 = scalar_select %p2264_p4, 1, 0 }
   0xc   : > { %s2494_s25 = scalar_select %p2269_p6, 1, 0 }
   0xd   : > { %p2274_p8 = pnand %p1624_p5, %p163_p7  ;;  %s175_s28 = sshll.u32 %s2193_s27, 4  ;;  %s176_s28 = int_to_ptr.vmem [resolvable:$true] %s175_s28 }
   0xe   : > { %s2194_s30 = smov [#allocation8]   ;;  %s2054_s7 = scalar_lea.vmem %s176_s28, 6144 }
   0xf   : > { %s2495_s26 = scalar_select %p2274_p8, 1, 0 }
  0x10   : > { %p1885_p9 = pneg %p2274_p8  ;;  %s191_s6 = sshll.u32 %s2194_s30, 4  ;;  %s192_s6 = int_to_ptr.vmem [resolvable:$true] %s191_s6 }
  0x11   : > { %p2055_p13 = scmp.ne.s32.totalorder %s176_s28, %s2054_s7  ;;  %p2062_p5 = scmp.lt.s32.totalorder %s176_s28, %s176_s28 }
  0x12   : > { %p2283_p11 = pnand %p1885_p9, %p2489_p1  ;;  %p2063_p7 = scmp.lt.s32.totalorder %s2054_s7, %s2054_s7 }
  0x14   : > { %p2045_p12 = pneg %p2283_p11  ;;  %p2064_p10 = por %p2063_p7, %p2062_p5 }
  0x16   : > { %p2057_p0 = pnand %p2055_p13, %p2045_p12 }
  0x18   : > { %p2058_p3 = pneg %p2057_p0 }
  0x1a   : > { %p2065_p9 = pnand %p2064_p10, %p2058_p3 }
  0x1c   : > { %2068 = shalt.err (!%p2065_p9)
}
  0x1d   : > { %s2195_s8 = smov 64   ;;  %s2196_s9 = smov 4  }
  0x1e   : > { %1888 = dma.hbm_to_vmem [thread:$0]  (!%p2283_p11), %s2484_s1, 6144, %s176_s28, [#allocation7], %s2195_s8, %s2195_s8, %s2196_s9  }
  0x1f   : > { %s2080_s12 = scalar_lea.vmem %s192_s6, 6144  ;;  %p2088_p2 = scmp.lt.s32.totalorder %s192_s6, %s192_s6 }
  0x20   : > { %p2081_p1 = scmp.ne.s32.totalorder %s192_s6, %s2080_s12  ;;  %p2089_p6 = scmp.lt.s32.totalorder %s2080_s12, %s2080_s12 }
  0x22   : > { %p2083_p13 = pnand %p2081_p1, %p2045_p12  ;;  %p2090_p5 = por %p2089_p6, %p2088_p2 }
  0x24   : > { %p2084_p0 = pneg %p2083_p13 }
  0x26   : > { %p2091_p10 = pnand %p2090_p5, %p2084_p0 }
  0x28   : > { %2094 = shalt.err (!%p2091_p10)
}
  0x29   : > { %1891 = dma.hbm_to_vmem [thread:$0]  (!%p2283_p11), %s2486_s3, 6144, %s192_s6, [#allocation7], %s2195_s8, %s2195_s8, %s2196_s9  }
  0x2a   : > { %s2306_s15 = sadd.s32 1, %s2191_s21   ;;  %s29_s16 = sadd.s32 1, %s2187_s20 }
  0x2b   : > { %s26_s17 = ssub.s32 %s2191_s21, %s2306_s15  ;;  %p36_p1 = scmp.ne.s32.totalorder %s2187_s20, %s2183_s19 }
  0x2c   : > { %p27_p2 = scmp.eq.s32.totalorder %s26_s17, 0  ;;  %p37_p6 = scmp.eq.s32.totalorder %s2191_s21, 0 }
  0x2d   : > { %p2497_p12 = scmp.eq.s32.totalorder %s2255_s22, 1  ;;  %p1902_p7 = scmp.lt.s32.totalorder %s2191_s21, 2 }
  0x2e   : > { %s2322_s27 = scalar_select %p27_p2, %s2187_s20, %s29_s16  }
  0x2f   : > { %p2316_p3 = por %p2497_p12, %p36_p1  ;;  %p38_p9 = por %p37_p6, %p36_p1 }
  0x30   : > { %s208_s28 = sand.u32 1, %s2187_s20   ;;  %s1739_s30 = sshll.u32 %s2191_s21, 8 }
  0x31   : > { %s2498_s23 = scalar_select %p2316_p3, 1, 0 }
  0x32   : > { %s1628_s29 = sshll.u32 %s208_s28, 4  ;;  %s2329_s8 = scalar_lea.hbm %s2483_s0, %s1739_s30 }
  0x33   : > { %s212_s9 = scalar_lea.vmem [#allocation3], %s1628_s29  ;;  %p2333_p11 = pnand %p1902_p7, %p38_p9 }
  0x34   : > { %s219_s10 = sshll.u32 %s212_s9, 4  ;;  %s2337_s12 = scalar_lea.sflag [#allocation4], %s208_s28  ;;  %s2331_s10 = int_to_ptr.vmem [resolvable:$true] %s219_s10 }
  0x35   : > { %s2095_s13 = scalar_lea.hbm %s2329_s8, 256  ;;  %p2097_p0 = pneg %p2333_p11 }
  0x36   : > { %p2096_p13 = scmp.ne.s32.totalorder %s2329_s8, %s2095_s13  ;;  %s2100_s17 = scalar_lea.hbm %s2483_s0, 512 }
  0x37   : > { %p2101_p1 = scmp.lt.s32.totalorder %s2329_s8, %s2483_s0  ;;  %p2102_p2 = scmp.lt.s32.totalorder %s2100_s17, %s2095_s13 }
  0x38   : > { %p2098_p5 = pnand %p2097_p0, %p2096_p13 }
  0x39   : > { %p2103_p6 = por %p2102_p2, %p2101_p1 }
  0x3a   : > { %p2099_p10 = pneg %p2098_p5 }
  0x3c   : > { %p2104_p12 = pnand %p2103_p6, %p2099_p10 }
  0x3e   : > { %2107 = shalt.err (!%p2104_p12)
}
  0x3f   : > { %s2108_s28 = scalar_lea.vmem %s2331_s10, 256  ;;  %s2197_s6 = smov [#allocation3]  }
  0x40   : > { %p2109_p7 = scmp.ne.s32.totalorder %s2331_s10, %s2108_s28  ;;  %s2113_s7 = sshll.u32 %s2197_s6, 4  ;;  %s2114_s7 = int_to_ptr.vmem [resolvable:$false] %s2113_s7 }
  0x41   : > { %s2115_s9 = scalar_lea.vmem %s2114_s7, 512  ;;  %p2116_p5 = scmp.lt.s32.totalorder %s2331_s10, %s2114_s7 }
  0x42   : > { %p2111_p9 = pnand %p2109_p7, %p2097_p0  ;;  %p2117_p3 = scmp.lt.s32.totalorder %s2115_s9, %s2108_s28 }
  0x44   : > { %p2112_p13 = pneg %p2111_p9  ;;  %p2118_p4 = por %p2117_p3, %p2116_p5 }
  0x46   : > { %p2119_p8 = pnand %p2118_p4, %p2112_p13 }
  0x48   : > { %2122 = shalt.err (!%p2119_p8)
}
  0x49   : > { %s2198_s13 = smov 128   ;;  %s2199_s14 = smov 8  }
  0x4a   : > { %1895 = dma.hbm_to_vmem [thread:$0]  (!%p2333_p11), %s2329_s8, 256, %s2331_s10, %s2337_s12, %s2198_s13, %s2198_s13, %s2199_s14  }
  0x4b   : > { %p2500_p0 = scmp.ne.s32.totalorder %s2495_s26, 0 }
  0x4c   : > { %s2361_s16 = sand.u32 (!%p2500_p0), 1, %s2183_s19   ;;  %p2501_p4 = scmp.ne.s32.totalorder (!%p2500_p0), %s2493_s24, 0 }
  0x4d   : > { %231 = sbr.rel (%p2500_p0) target bundleno = 843 (0x34b), region = 40  ;;  %s1632_s17 = sshll.u32 (!%p2500_p0), %s2361_s16, 4 }
  0x4e   : > { %s234_s29 = scalar_lea.sflag (!%p2500_p0), [#allocation4], %s2361_s16  ;;  %s2367_s30 = scalar_lea.vmem (!%p2500_p0), [#allocation3], %s1632_s17 }
  0x52   : > { %2166 = dma.done.wait (%p2501_p4), %s234_s29, 256  }
  0x53   : > { %2168 = vsyncadd (%p2501_p4), %s234_s29, 4294967040  ;;  %p2502_p8 = scmp.eq.s32.totalorder %s2255_s22, 0 }
  0x55   : > { %2170 = dma.done.wait (%p2502_p8), [#allocation7], 12288   ;;  %p2503_p3 = pmov %p2502_p8 }
  0x56   : > { %vm282_vm0 = vcmask 64513   ;;  %v273_v0 = vlaneseq  ;;  %vm288_vm1 = vcmask 1047617   ;;  %v2200_v1 = vmov 0.0   ;;  %v294_v2 = vld [vmem:[%s2367_s30] sm:$0xff]  ;;  %v295_v3 = vld [vmem:[%s2367_s30 + $0x8] sm:$0xff]  ;;  %s2201_s24 = smov 8  }
  0x57   : > { %2172 = vsyncadd (%p2503_p3), [#allocation7], 4294955008  ;;  %283 = vst.msk [vmem:[#allocation2] sm:$0xfe] %vm282_vm0, %v2200_v1  ;;  %vm286_vm2 = vcmask 57344   ;;  %vm292_vm3 = vcmask 1040448  }
  0x58   : > { %vm284_vm4 = vcmask 64512   ;;  %289 = vst.msk [vmem:[#allocation2 + $0x8] sm:$0xfe] %vm288_vm1, %v2200_v1  ;;  %vm290_vm5 = vcmask 1047616   ;;  %vm275_vm6 = vcmp.lt.s32.totalorder %v273_v0, 256  ;;  %vm298_vm7 = vcmask 1040384  }
  0x59   : > { %287 = vst.msk [vmem:[#allocation2 + $0x20] sm:$0x1] %vm286_vm2, %v2200_v1  ;;  %v299_v4 = vrot.slane %v294_v2, 7  ;;  %v300_v5 = vrot.slane %v295_v3, 7  ;;  %v1947_v6 = vld [vmem:[#allocation6 + $0x78] sm:$0xff]   ;;  %v1949_v8 = vld [vmem:[#allocation6 + $0x70] sm:$0xff]  }
  0x5a   : > { %293 = vst.msk [vmem:[#allocation2 + $0x28] sm:$0x1] %vm292_vm3, %v2200_v1  ;;  %v1948_v7 = vld [vmem:[#allocation6 + $0x38] sm:$0xff]   ;;  %1741 = vmatprep.subr.bf16.mxu0 %v1947_v6  ;;  %v1950_v10 = vld [vmem:[#allocation6 + $0x30] sm:$0xff]   ;;  %v1951_v11 = vld [vmem:[#allocation6 + $0x68] sm:$0xff]   ;;  %vm755_vm8 = vcmask 1046528  }
  0x5b   : > { %285 = vst.msk [vmem:[#allocation2 + $0x10] sm:$0xff] %vm284_vm4, %v2200_v1  ;;  %302 = vrot.lane.b32.xlu0 %v299_v4, %s2201_s24  ;;  %306 = vrot.lane.b32.xlu1 %v300_v5, %s2201_s24  ;;  %v301_v9 = vsel %vm298_vm7, %v299_v4, %v300_v5  ;;  %v1952_v12 = vld [vmem:[#allocation6 + $0xf8] sm:$0xff]   ;;  %v1953_v13 = vld [vmem:[#allocation6 + $0x28] sm:$0xff]   ;;  %v1955_v15 = vld [vmem:[#allocation6 + $0x60] sm:$0xff]   ;;  %vm544_vm9 = vsmask.f32 7424 }
  0x5c   : > { %291 = vst.msk [vmem:[#allocation2 + $0x18] sm:$0xff] %vm290_vm5, %v2200_v1  ;;  %1742 = vmatpush3.bf16.msra.mxu0 %v1948_v7  ;;  %1763 = vmatprep.subr.bf16.mxu1 %v1952_v12  ;;  %v1954_v14 = vld [vmem:[#allocation6 + $0xb8] sm:$0xff]   ;;  %v1956_v16 = vld [vmem:[#allocation6 + $0xf0] sm:$0xff]   ;;  %v1957_v17 = vld [vmem:[#allocation6 + $0x20] sm:$0xff]   ;;  %s271_s12 = scalar_lea.vmem [#allocation9], %s1632_s17  ;;  %s1740_s6 = sshll.u32 %s2255_s22, 8 }
  0x5d   : > { %277 = vst.msk [vmem:[#allocation2] ss:$8 sm:$0x3] %vm275_vm6, %v2200_v1  ;;  %280 = vst.msk [vmem:[#allocation2 + $0x21] ss:$8 sm:$0x3] %vm275_vm6, %v2200_v1  ;;  %1743 = vmatprep.subr.bf16.mxu0 %v1949_v8  ;;  %1764 = vmatpush3.bf16.msra.mxu1 %v1954_v14  ;;  %s2439_s13 = scalar_lea.hbm %s2488_s5, %s1740_s6 }
  0x5e   : > { %1765 = vmatprep.subr.bf16.mxu1 %v1956_v16  ;;  %v1958_v18 = vld [vmem:[#allocation6 + $0xb0] sm:$0xff]   ;;  %v1959_v19 = vld [vmem:[#allocation6 + $0x58] sm:$0xff]   ;;  %v1960_v20 = vld [vmem:[#allocation6 + $0xe8] sm:$0xff]   ;;  %s1531_s28 = sshll.u32 %s271_s12, 4  ;;  %s1518_s14 = scalar_lea.sflag [#allocation5], %s2361_s16  ;;  %s2434_s28 = int_to_ptr.vmem [resolvable:$true] %s1531_s28 }
  0x5f   : > { %304 = vrot.lane.b32.xlu0 %v301_v9, %s2201_s24  ;;  %v1961_v21 = vld [vmem:[#allocation6 + $0x18] sm:$0xff]   ;;  %v1962_v22 = vld [vmem:[#allocation6 + $0xa8] sm:$0xff]   ;;  %v1963_v23 = vld [vmem:[#allocation6 + $0x50] sm:$0xff]   ;;  %s2123_s17 = scalar_lea.vmem %s2434_s28, 256  ;;  %p2504_p10 = scmp.ne.s32.totalorder %s2498_s23, 0 }
  0x60   : > { %1744 = vmatpush3.bf16.msra.mxu0 %v1950_v10  ;;  %v1964_v24 = vld [vmem:[#allocation6 + $0xe0] sm:$0xff]   ;;  %v1965_v25 = vld [vmem:[#allocation6 + $0x10] sm:$0xff]   ;;  %v1967_v27 = vld [vmem:[#allocation6 + $0x48] sm:$0xff]   ;;  %p2124_p11 = scmp.ne.s32.totalorder %s2434_s28, %s2123_s17  ;;  %s2202_s22 = smov [#allocation9]  }
  0x61   : > { %1745 = vmatprep.subr.bf16.mxu0 %v1951_v11  ;;  %1766 = vmatpush3.bf16.msra.mxu1 %v1958_v18  ;;  %v1966_v26 = vld [vmem:[#allocation6 + $0xa0] sm:$0xff]   ;;  %v1968_v28 = vld [vmem:[#allocation6 + $0xd8] sm:$0xff]   ;;  %v1969_v29 = vld [vmem:[#allocation6 + $0x8] sm:$0xff]   ;;  %s2127_s29 = sshll.u32 %s2202_s22, 4  ;;  %s2128_s29 = int_to_ptr.vmem [resolvable:$false] %s2127_s29 }
  0x62   : > { %1767 = vmatprep.subr.bf16.mxu1 %v1960_v20  ;;  %v1970_v30 = vld [vmem:[#allocation6 + $0x98] sm:$0xff]   ;;  %v1971_v31 = vld [vmem:[#allocation6 + $0x40] sm:$0xff]   ;;  %v1972_v32 = vld [vmem:[#allocation6 + $0xd0] sm:$0xff]   ;;  %p2125_p1 = pnand %p2124_p11, %p2504_p10  ;;  %p2130_p6 = scmp.lt.s32.totalorder %s2434_s28, %s2128_s29 }
  0x63   : > { %v1973_v33 = vld [vmem:[#allocation6] sm:$0xff]   ;;  %v1974_v34 = vld [vmem:[#allocation6 + $0x90] sm:$0xff]   ;;  %v1975_v35 = vld [vmem:[#allocation6 + $0xc8] sm:$0xff]  }
  0x64   : > { %1746 = vmatpush3.bf16.msra.mxu0 %v1953_v13  ;;  %v1976_v36 = vld [vmem:[#allocation6 + $0x178] sm:$0xff]   ;;  %v1977_v37 = vld [vmem:[#allocation6 + $0x88] sm:$0xff]   ;;  %v1979_v38 = vld [vmem:[#allocation6 + $0xc0] sm:$0xff]   ;;  %p2126_p2 = pneg %p2125_p1 }
  0x65   : > { %1747 = vmatprep.subr.bf16.mxu0 %v1955_v15  ;;  %1768 = vmatpush3.bf16.msra.mxu1 %v1962_v22  ;;  %v1981_v39 = vld [vmem:[#allocation6 + $0x80] sm:$0xff]   ;;  %v1978_v59 = vld [vmem:[#allocation6 + $0x138] sm:$0xff]   ;;  %v1980_v63 = vld [vmem:[#allocation6 + $0x170] sm:$0xff]  }
  0x66   : > { %1769 = vmatprep.subr.bf16.mxu1 %v1964_v24  ;;  %v1982_v6 = vld [vmem:[#allocation6 + $0x130] sm:$0xff]   ;;  %v1983_v13 = vld [vmem:[#allocation6 + $0x168] sm:$0xff]   ;;  %v1986_v20 = vld [vmem:[#allocation6 + $0x120] sm:$0xff]  }
  0x67   : > { %v1988_v22 = vld [vmem:[#allocation6 + $0x118] sm:$0xff]   ;;  %v1990_v24 = vld [vmem:[#allocation6 + $0x110] sm:$0xff]  }
  0x68   : > { %1748 = vmatpush3.bf16.msra.mxu0 %v1957_v17  ;;  %v1984_v17 = vld [vmem:[#allocation6 + $0x128] sm:$0xff]  }
  0x69   : > { %1749 = vmatprep.subr.bf16.mxu0 %v1959_v19  ;;  %1770 = vmatpush3.bf16.msra.mxu1 %v1966_v26  ;;  %v1985_v19 = vld [vmem:[#allocation6 + $0x160] sm:$0xff]  }
  0x6a   : > { %1771 = vmatprep.subr.bf16.mxu1 %v1968_v28  ;;  %v1993_v28 = vld [vmem:[#allocation6 + $0x140] sm:$0xff]  }
  0x6c   : > { %1750 = vmatpush3.bf16.msra.mxu0 %v1961_v21  ;;  %v1987_v21 = vld [vmem:[#allocation6 + $0x158] sm:$0xff]  }
  0x6d   : > { %1751 = vmatprep.subr.bf16.mxu0 %v1963_v23  ;;  %1772 = vmatpush3.bf16.msra.mxu1 %v1970_v30  ;;  %v1989_v23 = vld [vmem:[#allocation6 + $0x150] sm:$0xff]  }
  0x6e   : > { %1773 = vmatprep.subr.bf16.mxu1 %v1972_v32  ;;  %v1994_v32 = vld [vmem:[#allocation6 + $0x100] sm:$0xff]  }
  0x70   : > { %1752 = vmatpush3.bf16.msra.mxu0 %v1965_v25  ;;  %v1991_v25 = vld [vmem:[#allocation6 + $0x148] sm:$0xff]  }
  0x71   : > { %1753 = vmatprep.subr.bf16.mxu0 %v1967_v27  ;;  %1774 = vmatpush3.bf16.msra.mxu1 %v1974_v34  ;;  %v1992_v27 = vld [vmem:[#allocation6 + $0x108] sm:$0xff]  }
  0x72   : > { %1775 = vmatprep.subr.bf16.mxu1 %v1975_v35 }
  0x74   : > { %1754 = vmatpush3.bf16.msra.mxu0 %v1969_v29 }
  0x75   : > { %1755 = vmatprep.subr.bf16.mxu0 %v1971_v31  ;;  %1776 = vmatpush3.bf16.msra.mxu1 %v1977_v37  ;;  %v1996_v37 = vld [vmem:[#allocation8 + $0x38] sm:$0xff]  }
  0x76   : > { %1777 = vmatprep.subr.bf16.mxu1 %v1979_v38  ;;  %v1997_v38 = vld [vmem:[#allocation8 + $0x70] sm:$0xff]  }
  0x78   : > { %1756 = vmatpush3.bf16.msra.mxu0 %v1973_v33 }
  0x79   : > { %1785 = vmatprep.subr.bf16.mxu0 %v1976_v36  ;;  %1778 = vmatpush3.bf16.msra.mxu1 %v1981_v39  ;;  %v1995_v36 = vld [vmem:[#allocation8 + $0x78] sm:$0xff]  }
  0x7a   : > { %v2000_v39 = vld [vmem:[#allocation8 + $0xf8] sm:$0xff]   ;;  %1807 = vmatprep.subr.bf16.mxu1 %v1995_v36 }
  0xcd   : > { %v303_v40 = vpop.permute.xlu0 %302  ;;  %v307_v41 = vpop.permute.xlu1 %306 }
  0xce   : > { %311 = vst.msk [vmem:[#allocation2] sm:$0xfe] %vm288_vm1, %v303_v40 }
  0xcf   : > { %312 = vst.msk [vmem:[#allocation2 + $0x8] sm:$0xfe] %vm282_vm0, %v303_v40  ;;  %v2002_v40 = vld [vmem:[#allocation8 + $0xb8] sm:$0xff]  }
  0xd0   : > { %315 = vst.msk [vmem:[#allocation2 + $0x20] sm:$0x1] %vm292_vm3, %v307_v41 }
  0xd1   : > { %316 = vst.msk [vmem:[#allocation2 + $0x28] sm:$0x1] %vm286_vm2, %v307_v41  ;;  %v305_v42 = vpop.permute.xlu0 %304  ;;  %v1998_v41 = vld [vmem:[#allocation8 + $0x30] sm:$0xff]  }
  0xd2   : > { %313 = vst.msk [vmem:[#allocation2 + $0x10] sm:$0xff] %vm290_vm5, %v305_v42 }
  0xd3   : > { %314 = vst.msk [vmem:[#allocation2 + $0x18] sm:$0xff] %vm284_vm4, %v305_v42  ;;  %v2004_v42 = vld [vmem:[#allocation8 + $0xf0] sm:$0xff]  }
  0xd5   : > { %v324_v49 = vld [vmem:[#allocation2] sm:$0xff] }
  0xd6   : > { %v325_v48 = vld [vmem:[#allocation2 + $0x8] sm:$0xff]  ;;  %v501_v62 = vld [vmem:[#allocation2] sm:$0xfe] }
  0xd7   : > { %v505_v47 = vld [vmem:[#allocation2 + $0x20] sm:$0x1]  ;;  %v711_v50 = vld [vmem:[#allocation2 + $0x8] sm:$0xfc]  ;;  %v710_v29 = vld [vmem:[#allocation2] sm:$0xfc] }
  0xd8   : > { %v713_v43 = vld [vmem:[#allocation2 + $0x28] sm:$0x3]  ;;  %v509_v51 = vpack.c.bf16 %v505_v47, %v505_v47  ;;  %v712_v26 = vld [vmem:[#allocation2 + $0x20] sm:$0x3]  ;;  %v2003_v47 = vld [vmem:[#allocation8 + $0x60] sm:$0xff]  }
  0xd9   : > { %v506_v44 = vld [vmem:[#allocation2 + $0x28] sm:$0x1]  ;;  %v717_v45 = vpack.c.bf16 %v713_v43, %v713_v43  ;;  %v2395_v53 = vld [vmem:[#allocation2 + $0x10] sm:$0xff]  ;;  %v502_v55 = vld [vmem:[#allocation2 + $0x8] sm:$0xfe]  ;;  %v716_v31 = vpack.c.bf16 %v712_v26, %v712_v26 }
  0xda   : > { %v510_v46 = vpack.c.bf16 %v506_v44, %v506_v44  ;;  %v327_v52 = vld [vmem:[#allocation2 + $0x18] sm:$0xff]  ;;  %v328_v58 = vpack.c.bf16 %v2395_v53, %v324_v49  ;;  %v507_v0 = vpack.c.bf16 %v2395_v53, %v501_v62  ;;  %v553_v1 = vshll.u32 %v509_v51, 16  ;;  %v2006_v44 = vld [vmem:[#allocation8 + $0xb0] sm:$0xff]   ;;  %v2007_v49 = vld [vmem:[#allocation8 + $0x58] sm:$0xff]  }
  0xdb   : > { %v760_v54 = vrot.slane %v717_v45, 1  ;;  %v329_v57 = vpack.c.bf16 %v327_v52, %v325_v48  ;;  %v715_v60 = vpack.c.bf16 %v327_v52, %v711_v50  ;;  %v508_v61 = vpack.c.bf16 %v327_v52, %v502_v55  ;;  %v1999_v43 = vld [vmem:[#allocation8 + $0x68] sm:$0xff]   ;;  %v2005_v48 = vld [vmem:[#allocation8 + $0x20] sm:$0xff]  }
  0xdc   : > { %v565_v56 = vshll.u32 %v510_v46, 16  ;;  %v548_v4 = vshll.u32 %v507_v0, 16  ;;  %v546_v10 = vshrl.u32 %v507_v0, 16  ;;  %v555_v12 = vrot.slane %v553_v1, 1  ;;  %v2008_v45 = vld [vmem:[#allocation8 + $0xe8] sm:$0xff]   ;;  %v2012_v62 = vld [vmem:[#allocation8 + $0xe0] sm:$0xff]  }
  0xdd   : > { %490 = vmatprep.mubr.bf16.mxu0 %v329_v57  ;;  %v759_v2 = vrot.slane %v715_v60, 1  ;;  %v560_v3 = vshll.u32 %v508_v61, 16  ;;  %v558_v7 = vshrl.u32 %v508_v61, 16  ;;  %v714_v30 = vpack.c.bf16 %v2395_v53, %v710_v29  ;;  %v2001_v46 = vld [vmem:[#allocation8 + $0x28] sm:$0xff]   ;;  %v2009_v57 = vld [vmem:[#allocation8 + $0x18] sm:$0xff]   ;;  %v2011_v61 = vld [vmem:[#allocation8 + $0x50] sm:$0xff]  }
  0xde   : > { %491 = vmatmul.mubr.bf16.vlgmr.msra.gmra.mxu0 %v328_v58  ;;  %v567_v9 = vrot.slane %v565_v56, 1  ;;  %v550_v11 = vrot.slane %v548_v4, 1  ;;  %v757_v34 = vrot.slane %v716_v31, 1  ;;  %v2010_v58 = vld [vmem:[#allocation8 + $0xa8] sm:$0xff]   ;;  %v2013_v4 = vld [vmem:[#allocation8 + $0x10] sm:$0xff]   ;;  %v2024_v29 = vld [vmem:[#allocation8 + $0x178] sm:$0xff]  }
  0xdf   : > { %1786 = vmatpush3.bf16.msra.mxu0 %v1978_v59  ;;  %v761_v5 = vsel %vm755_vm8, %v759_v2, %v760_v54  ;;  %v562_v8 = vrot.slane %v560_v3, 1  ;;  %v756_v33 = vrot.slane %v714_v30, 1  ;;  %v1636_v59 = vld [vmem:[%s2485_s2] ss:$0 sm:$0xff]  ;;  %v2025_v31 = vld [vmem:[#allocation8 + $0x88] sm:$0xff]  }
  0xe0   : > { %892 = vmatprep.mubr.bf16.mxu0 %v761_v5  ;;  %1787 = vmatprep.subr.bf16.mxu0 %v1980_v63  ;;  %v551_v15 = vor.u32 %v550_v11, %v546_v10  ;;  %v2014_v5 = vld [vmem:[#allocation8 + $0xa0] sm:$0xff]   ;;  %v2015_v10 = vld [vmem:[#allocation8 + $0x48] sm:$0xff]   ;;  %v2016_v11 = vld [vmem:[#allocation8 + $0xd8] sm:$0xff]  }
  0xe1   : > { %v563_v14 = vor.u32 %v562_v8, %v558_v7  ;;  %v758_v35 = vsel %vm755_vm8, %v756_v33, %v757_v34  ;;  %v2027_v33 = vld [vmem:[#allocation8 + $0xc0] sm:$0xff]  }
  0xe2   : > { %v556_v18 = vsel %vm544_vm9, %v551_v15, %v555_v12  ;;  %v2017_v12 = vld [vmem:[#allocation8 + $0x8] sm:$0xff]   ;;  %v2019_v15 = vld [vmem:[#allocation8 + $0x40] sm:$0xff]  }
  0xe3   : > { %1788 = vmatpush3.bf16.msra.mxu0 %v1982_v6  ;;  %v568_v16 = vsel %vm544_vm9, %v563_v14, %v567_v9  ;;  %v2018_v14 = vld [vmem:[#allocation8 + $0x98] sm:$0xff]   ;;  %v2029_v34 = vld [vmem:[#allocation8 + $0x80] sm:$0xff]  }
  0xe4   : > { %699 = vmatprep.mubr.bf16.mxu1 %v568_v16  ;;  %1789 = vmatprep.subr.bf16.mxu0 %v1983_v13  ;;  %v2020_v16 = vld [vmem:[#allocation8 + $0xd0] sm:$0xff]  }
  0xe5   : > { %700 = vmatmul.mubr.bf16.vlgmr.msra.gmra.mxu1 %v556_v18 }
  0xe6   : > { %1808 = vmatpush3.bf16.msra.mxu1 %v1996_v37 }
  0xe7   : > { %1790 = vmatpush3.bf16.msra.mxu0 %v1984_v17  ;;  %1809 = vmatprep.subr.bf16.mxu1 %v1997_v38 }
  0xe8   : > { %1791 = vmatprep.subr.bf16.mxu0 %v1985_v19 }
  0xea   : > { %1810 = vmatpush3.bf16.msra.mxu1 %v1998_v41 }
  0xeb   : > { %1792 = vmatpush3.bf16.msra.mxu0 %v1986_v20  ;;  %1811 = vmatprep.subr.bf16.mxu1 %v1999_v43 }
  0xec   : > { %1793 = vmatprep.subr.bf16.mxu0 %v1987_v21 }
  0xee   : > { %1812 = vmatpush3.bf16.msra.mxu1 %v2001_v46 }
  0xef   : > { %1794 = vmatpush3.bf16.msra.mxu0 %v1988_v22  ;;  %1813 = vmatprep.subr.bf16.mxu1 %v2003_v47 }
  0xf0   : > { %1795 = vmatprep.subr.bf16.mxu0 %v1989_v23  ;;  %v2021_v23 = vld [vmem:[#allocation8] sm:$0xff]  }
  0xf2   : > { %1814 = vmatpush3.bf16.msra.mxu1 %v2005_v48 }
  0xf3   : > { %1796 = vmatpush3.bf16.msra.mxu0 %v1990_v24  ;;  %1815 = vmatprep.subr.bf16.mxu1 %v2007_v49  ;;  %v2022_v24 = vld [vmem:[#allocation8 + $0x90] sm:$0xff]  }
  0xf4   : > { %1797 = vmatprep.subr.bf16.mxu0 %v1991_v25 }
  0xf6   : > { %1816 = vmatpush3.bf16.msra.mxu1 %v2009_v57  ;;  %v2028_v57 = vld [vmem:[#allocation8 + $0x170] sm:$0xff]  }
  0xf7   : > { %1798 = vmatpush3.bf16.msra.mxu0 %v1992_v27  ;;  %1817 = vmatprep.subr.bf16.mxu1 %v2011_v61 }
  0xf8   : > { %1799 = vmatprep.subr.bf16.mxu0 %v1993_v28  ;;  %v2023_v28 = vld [vmem:[#allocation8 + $0xc8] sm:$0xff]  }
  0xfa   : > { %1818 = vmatpush3.bf16.msra.mxu1 %v2013_v4 }
  0xfb   : > { %1800 = vmatpush3.bf16.msra.mxu0 %v1994_v32  ;;  %1819 = vmatprep.subr.bf16.mxu1 %v2015_v10 }
  0xfc   : > { %1829 = vmatprep.subr.bf16.mxu0 %v2000_v39 }
  0xfe   : > { %893 = vmatmul.mubr.bf16.vlgmr.msra.gmra.mxu0 %v758_v35  ;;  %1820 = vmatpush3.bf16.msra.mxu1 %v2017_v12  ;;  %v2032_v12 = vld [vmem:[#allocation8 + $0x128] sm:$0xff]  }
  0xff   : > { %1830 = vmatpush3.bf16.msra.mxu0 %v2002_v40  ;;  %1821 = vmatprep.subr.bf16.mxu1 %v2019_v15  ;;  %v2034_v15 = vld [vmem:[#allocation8 + $0x120] sm:$0xff]  }
 0x100   : > { %1831 = vmatprep.subr.bf16.mxu0 %v2004_v42 }
 0x102   : > { %1822 = vmatpush3.bf16.msra.mxu1 %v2021_v23  ;;  %v2041_v23 = vld [vmem:[#allocation8 + $0x140] sm:$0xff]  }
 0x103   : > { %1832 = vmatpush3.bf16.msra.mxu0 %v2006_v44  ;;  %1851 = vmatprep.subr.bf16.mxu1 %v2024_v29 }
 0x104   : > { %1833 = vmatprep.subr.bf16.mxu0 %v2008_v45 }
 0x107   : > { %1834 = vmatpush3.bf16.msra.mxu0 %v2010_v58 }
 0x108   : > { %1835 = vmatprep.subr.bf16.mxu0 %v2012_v62 }
 0x10b   : > { %1836 = vmatpush3.bf16.msra.mxu0 %v2014_v5 }
 0x10c   : > { %1837 = vmatprep.subr.bf16.mxu0 %v2016_v11 }
 0x10f   : > { %1838 = vmatpush3.bf16.msra.mxu0 %v2018_v14  ;;  %v2033_v14 = vld [vmem:[#allocation8 + $0x160] sm:$0xff]  }
 0x110   : > { %1839 = vmatprep.subr.bf16.mxu0 %v2020_v16  ;;  %v2035_v16 = vld [vmem:[#allocation8 + $0x158] sm:$0xff]  }
 0x113   : > { %1840 = vmatpush3.bf16.msra.mxu0 %v2022_v24 }
 0x114   : > { %1841 = vmatprep.subr.bf16.mxu0 %v2023_v28 }
 0x117   : > { %1842 = vmatpush3.bf16.msra.mxu0 %v2025_v31 }
 0x118   : > { %1843 = vmatprep.subr.bf16.mxu0 %v2027_v33 }
 0x11b   : > { %1844 = vmatpush3.bf16.msra.mxu0 %v2029_v34 }
 0x19e   : > { %v1757_v50 = vpop.f32.mrf.mxu0 }
 0x1a0   : > { %v1758_v52 = vpop.f32.mrf.mxu0 }
 0x1a1   : > { %v1759_v56 = vadd.f32 %v1758_v52, %v1757_v50  ;;  %v2026_v52 = vld [vmem:[#allocation8 + $0x138] sm:$0xff]  }
 0x1a2   : > { %v1760_v54 = vpop.f32.mrf.mxu0 }
 0x1a3   : > { %v499_v2 = vadd.f32 %v1759_v56, %v1636_v59 }
 0x1a4   : > { %v1761_v60 = vpop.f32.mrf.mxu0 }
 0x1a5   : > { %v1779_v51 = vpop.f32.mrf.mxu1  ;;  %v1762_v3 = vadd.f32 %v1761_v60, %v1760_v54 }
 0x1a7   : > { %v1780_v53 = vpop.f32.mrf.mxu1  ;;  %v500_v17 = vadd.f32 %v1762_v3, %v1636_v59 }
 0x1a8   : > { %v1781_v63 = vadd.f32 %v1780_v53, %v1779_v51 }
 0x1a9   : > { %v1782_v55 = vpop.f32.mrf.mxu1 }
 0x1aa   : > { %v708_v7 = vadd.f32 %v1781_v63, %v499_v2 }
 0x1ab   : > { %v1783_v0 = vpop.f32.mrf.mxu1 }
 0x1ac   : > { %v1784_v8 = vadd.f32 %v1783_v0, %v1782_v55 }
 0x1ae   : > { %v709_v20 = vadd.f32 %v1784_v8, %v500_v17  ;;  %v2036_v17 = vld [vmem:[#allocation8 + $0x118] sm:$0xff]  }
 0x1be   : > { %v1801_v1 = vpop.f32.mrf.mxu0 }
 0x1c0   : > { %v1802_v6 = vpop.f32.mrf.mxu0 }
 0x1c1   : > { %v1803_v9 = vadd.f32 %v1802_v6, %v1801_v1  ;;  %v2030_v1 = vld [vmem:[#allocation8 + $0x130] sm:$0xff]   ;;  %v2031_v6 = vld [vmem:[#allocation8 + $0x168] sm:$0xff]  }
 0x1c2   : > { %v1804_v13 = vpop.f32.mrf.mxu0 }
 0x1c3   : > { %v901_v18 = vadd.f32 %v1803_v9, %v708_v7 }
 0x1c4   : > { %v1805_v19 = vpop.f32.mrf.mxu0 }
 0x1c5   : > { %v903_v21 = vmax.f32 %v901_v18, 0.0  ;;  %v1806_v22 = vadd.f32 %v1805_v19, %v1804_v13  ;;  %v2037_v18 = vld [vmem:[#allocation8 + $0x150] sm:$0xff]  }
 0x1c6   : > { %v2038_v19 = vld [vmem:[#allocation8 + $0x110] sm:$0xff]  }
 0x1c7   : > { %v907_v25 = vrot.slane %v903_v21, 7  ;;  %v902_v26 = vadd.f32 %v1806_v22, %v709_v20  ;;  %v2039_v20 = vld [vmem:[#allocation8 + $0x148] sm:$0xff]  }
 0x1c8   : > { %v2040_v22 = vld [vmem:[#allocation8 + $0x108] sm:$0xff]  }
 0x1c9   : > { %v904_v27 = vmax.f32 %v902_v26, 0.0  ;;  %910 = vrot.lane.b32.xlu1 %v907_v25, %s2201_s24 }
 0x1cb   : > { %v908_v30 = vrot.slane %v904_v27, 7  ;;  %v2042_v27 = vld [vmem:[#allocation8 + $0x100] sm:$0xff]  }
 0x1cd   : > { %914 = vrot.lane.b32.xlu1 %v908_v30, %s2201_s24  ;;  %v909_v32 = vsel %vm298_vm7, %v907_v25, %v908_v30 }
 0x1ce   : > { %912 = vrot.lane.b32.xlu0 %v909_v32, %s2201_s24 }
 0x23b   : > { %v911_v35 = vpop.permute.xlu1 %910 }
 0x23c   : > { %919 = vst.msk [vmem:[#allocation2] sm:$0xfe] %vm288_vm1, %v911_v35 }
 0x23d   : > { %920 = vst.msk [vmem:[#allocation2 + $0x8] sm:$0xfe] %vm282_vm0, %v911_v35 }
 0x23f   : > { %v915_v36 = vpop.permute.xlu1 %914 }
 0x240   : > { %923 = vst.msk [vmem:[#allocation2 + $0x20] sm:$0x1] %vm292_vm3, %v915_v36  ;;  %v913_v37 = vpop.permute.xlu0 %912 }
 0x241   : > { %924 = vst.msk [vmem:[#allocation2 + $0x28] sm:$0x1] %vm286_vm2, %v915_v36 }
 0x242   : > { %921 = vst.msk [vmem:[#allocation2 + $0x10] sm:$0xff] %vm290_vm5, %v913_v37 }
 0x243   : > { %922 = vst.msk [vmem:[#allocation2 + $0x18] sm:$0xff] %vm284_vm4, %v913_v37  ;;  %v932_v39 = vld [vmem:[#allocation2] sm:$0xff] }
 0x244   : > { %v933_v38 = vld [vmem:[#allocation2 + $0x8] sm:$0xff]  ;;  %v1109_v55 = vld [vmem:[#allocation2] sm:$0xfe] }
 0x245   : > { %v1110_v40 = vld [vmem:[#allocation2 + $0x8] sm:$0xfe]  ;;  %v1317_v24 = vld [vmem:[#allocation2] sm:$0xfc] }
 0x246   : > { %v1318_v46 = vld [vmem:[#allocation2 + $0x8] sm:$0xfc] }
 0x247   : > { %v1113_v43 = vld [vmem:[#allocation2 + $0x20] sm:$0x1] }
 0x248   : > { %v1320_v41 = vld [vmem:[#allocation2 + $0x28] sm:$0x3]  ;;  %v1117_v49 = vpack.c.bf16 %v1113_v43, %v1113_v43  ;;  %v1319_v21 = vld [vmem:[#allocation2 + $0x20] sm:$0x3] }
 0x249   : > { %v1114_v42 = vld [vmem:[#allocation2 + $0x28] sm:$0x1]  ;;  %v2417_v45 = vld [vmem:[#allocation2 + $0x10] sm:$0xff]  ;;  %v1324_v47 = vpack.c.bf16 %v1320_v41, %v1320_v41  ;;  %v1323_v26 = vpack.c.bf16 %v1319_v21, %v1319_v21 }
 0x24a   : > { %v935_v44 = vld [vmem:[#allocation2 + $0x18] sm:$0xff]  ;;  %v1118_v48 = vpack.c.bf16 %v1114_v42, %v1114_v42  ;;  %v936_v51 = vpack.c.bf16 %v2417_v45, %v932_v39  ;;  %v1115_v58 = vpack.c.bf16 %v2417_v45, %v1109_v55  ;;  %v1160_v63 = vshll.u32 %v1117_v49, 16 }
 0x24b   : > { %v937_v50 = vpack.c.bf16 %v935_v44, %v933_v38  ;;  %v1116_v53 = vpack.c.bf16 %v935_v44, %v1110_v40  ;;  %v1322_v54 = vpack.c.bf16 %v935_v44, %v1318_v46  ;;  %v1366_v56 = vrot.slane %v1324_v47, 1  ;;  %v1685_v38 = vld [vmem:[%s2487_s4] ss:$0 sm:$0xff] }
 0x24c   : > { %v1172_v61 = vshll.u32 %v1118_v48, 16  ;;  %v1155_v62 = vshll.u32 %v1115_v58, 16  ;;  %v1153_v4 = vshrl.u32 %v1115_v58, 16  ;;  %v1162_v10 = vrot.slane %v1160_v63, 1 }
 0x24d   : > { %1098 = vmatprep.mubr.bf16.mxu1 %v937_v50  ;;  %v1365_v59 = vrot.slane %v1322_v54, 1  ;;  %v1167_v60 = vshll.u32 %v1116_v53, 16  ;;  %v1165_v2 = vshrl.u32 %v1116_v53, 16  ;;  %v1321_v25 = vpack.c.bf16 %v2417_v45, %v1317_v24 }
 0x24e   : > { %1099 = vmatmul.mubr.bf16.vlgmr.msra.gmra.mxu1 %v936_v51  ;;  %v1157_v5 = vrot.slane %v1155_v62, 1  ;;  %v1174_v8 = vrot.slane %v1172_v61, 1  ;;  %v1363_v29 = vrot.slane %v1323_v26, 1 }
 0x24f   : > { %1852 = vmatpush3.bf16.msra.mxu1 %v2026_v52  ;;  %v1367_v0 = vsel %vm755_vm8, %v1365_v59, %v1366_v56  ;;  %v1169_v3 = vrot.slane %v1167_v60, 1  ;;  %v1362_v28 = vrot.slane %v1321_v25, 1  ;;  %v1511_v52 = vld [vmem:[%s2367_s30] sm:$0xff]  ;;  %v1512_v59 = vld [vmem:[%s2367_s30 + $0x8] sm:$0xff]  ;;  %s2129_s30 = scalar_lea.vmem %s2128_s29, 512 }
 0x250   : > { %1498 = vmatprep.mubr.bf16.mxu1 %v1367_v0  ;;  %1853 = vmatprep.subr.bf16.mxu1 %v2028_v57  ;;  %v1158_v9 = vor.u32 %v1157_v5, %v1153_v4  ;;  %p2131_p12 = scmp.lt.s32.totalorder %s2129_s30, %s2123_s17 }
 0x251   : > { %v1170_v7 = vor.u32 %v1169_v3, %v1165_v2  ;;  %v1364_v30 = vsel %vm755_vm8, %v1362_v28, %v1363_v29 }
 0x252   : > { %v1163_v13 = vsel %vm544_vm9, %v1158_v9, %v1162_v10  ;;  %p2132_p7 = por %p2131_p12, %p2130_p6 }
 0x253   : > { %1854 = vmatpush3.bf16.msra.mxu1 %v2030_v1  ;;  %v1175_v11 = vsel %vm544_vm9, %v1170_v7, %v1174_v8 }
 0x254   : > { %1306 = vmatprep.mubr.bf16.mxu0 %v1175_v11  ;;  %1855 = vmatprep.subr.bf16.mxu1 %v2031_v6  ;;  %p2133_p9 = pnand %p2132_p7, %p2126_p2 }
 0x255   : > { %1307 = vmatmul.mubr.bf16.vlgmr.msra.gmra.mxu0 %v1163_v13 }
 0x257   : > { %1856 = vmatpush3.bf16.msra.mxu1 %v2032_v12 }
 0x258   : > { %1857 = vmatprep.subr.bf16.mxu1 %v2033_v14 }
 0x25b   : > { %1858 = vmatpush3.bf16.msra.mxu1 %v2034_v15 }
 0x25c   : > { %1859 = vmatprep.subr.bf16.mxu1 %v2035_v16 }
 0x25f   : > { %1860 = vmatpush3.bf16.msra.mxu1 %v2036_v17 }
 0x260   : > { %1861 = vmatprep.subr.bf16.mxu1 %v2037_v18 }
 0x263   : > { %1862 = vmatpush3.bf16.msra.mxu1 %v2038_v19 }
 0x264   : > { %1863 = vmatprep.subr.bf16.mxu1 %v2039_v20 }
 0x267   : > { %1864 = vmatpush3.bf16.msra.mxu1 %v2040_v22 }
 0x268   : > { %1865 = vmatprep.subr.bf16.mxu1 %v2041_v23 }
 0x26b   : > { %1866 = vmatpush3.bf16.msra.mxu1 %v2042_v27 }
 0x26e   : > { %1499 = vmatmul.mubr.bf16.vlgmr.msra.gmra.mxu1 %v1364_v30 }
 0x30e   : > { %v1823_v31 = vpop.f32.mrf.mxu1 }
 0x310   : > { %v1824_v33 = vpop.f32.mrf.mxu1 }
 0x311   : > { %v1825_v37 = vadd.f32 %v1824_v33, %v1823_v31 }
 0x312   : > { %v1826_v35 = vpop.f32.mrf.mxu1 }
 0x313   : > { %v1107_v43 = vadd.f32 %v1825_v37, %v1685_v38 }
 0x314   : > { %v1827_v39 = vpop.f32.mrf.mxu1 }
 0x315   : > { %v1845_v32 = vpop.f32.mrf.mxu0  ;;  %v1828_v44 = vadd.f32 %v1827_v39, %v1826_v35 }
 0x317   : > { %v1846_v34 = vpop.f32.mrf.mxu0  ;;  %v1108_v50 = vadd.f32 %v1828_v44, %v1685_v38 }
 0x318   : > { %v1847_v40 = vadd.f32 %v1846_v34, %v1845_v32 }
 0x319   : > { %v1848_v36 = vpop.f32.mrf.mxu0 }
 0x31a   : > { %v1315_v46 = vadd.f32 %v1847_v40, %v1107_v43 }
 0x31b   : > { %v1849_v41 = vpop.f32.mrf.mxu0 }
 0x31c   : > { %v1850_v47 = vadd.f32 %v1849_v41, %v1848_v36 }
 0x31e   : > { %v1316_v54 = vadd.f32 %v1850_v47, %v1108_v50 }
 0x32e   : > { %v1867_v42 = vpop.f32.mrf.mxu1 }
 0x330   : > { %v1868_v45 = vpop.f32.mrf.mxu1 }
 0x331   : > { %v1869_v48 = vadd.f32 %v1868_v45, %v1867_v42 }
 0x332   : > { %v1870_v49 = vpop.f32.mrf.mxu1 }
 0x333   : > { %v1507_v51 = vadd.f32 %v1869_v48, %v1315_v46 }
 0x334   : > { %v1871_v53 = vpop.f32.mrf.mxu1 }
 0x335   : > { %v1509_v55 = vmul.f32 0.1, %v1507_v51  ;;  %v1872_v56 = vadd.f32 %v1871_v53, %v1870_v49 }
 0x337   : > { %v1513_v57 = vadd.f32 %v1511_v52, %v1509_v55  ;;  %v1508_v58 = vadd.f32 %v1872_v56, %v1316_v54 }
 0x339   : > { %1515 = vst [vmem:[%s271_s12] sm:$0xff] %v1513_v57  ;;  %v1510_v60 = vmul.f32 0.1, %v1508_v58 }
 0x33b   : > { %v1514_v61 = vadd.f32 %v1512_v59, %v1510_v60 }
 0x33d   : > { %1516 = vst [vmem:[%s271_s12 + $0x8] sm:$0xff] %v1514_v61 }
 0x33e   : > { %2136 = shalt.err (!%p2133_p9)
}
 0x33f   : > { %s2137_s26 = scalar_lea.hbm %s2439_s13, 256  ;;  %s2141_s11 = scalar_lea.hbm %s2488_s5, 512 }
 0x340   : > { %p2138_p13 = scmp.ne.s32.totalorder %s2439_s13, %s2137_s26  ;;  %p2142_p4 = scmp.lt.s32.totalorder %s2439_s13, %s2488_s5 }
 0x341   : > { %p2143_p8 = scmp.lt.s32.totalorder %s2141_s11, %s2137_s26 }
 0x342   : > { %p2139_p5 = pnand %p2138_p13, %p2504_p10 }
 0x343   : > { %p2144_p3 = por %p2143_p8, %p2142_p4 }
 0x344   : > { %p2140_p0 = pneg %p2139_p5 }
 0x346   : > { %p2145_p11 = pnand %p2144_p3, %p2140_p0 }
 0x348   : > { %2148 = shalt.err (!%p2145_p11)
}
 0x349   : > { %s2203_s7 = smov 128  }
 0x34a   : > { %1883 = dma.vmem_to_hbm [thread:$0]  (%p2504_p10), %s2434_s28, 256, %s2439_s13, %s1518_s14, %s2203_s7, %s2203_s7, %s2201_s24  }
 0x34b PF: > { %s1546_s9 = sand.u32 1, %s2179_s18   ;;  %p2505_p1 = scmp.ne.s32.totalorder %s2494_s25, 0 }
 0x34c   : > { %p2506_p2 = scmp.ge.s32.totalorder %s2191_s21, 2  ;;  %s1547_s17 = scalar_lea.sflag [#allocation5], %s1546_s9 }
 0x34e   : > { %p1897_p6 = pnand %p2506_p2, %p2505_p1 }
 0x350   : > { %p1898_p12 = pneg %p1897_p6 }
 0x352   : > { %2174 = dma.done.wait (%p1898_p12), %s1547_s17, 256  }
 0x353   : > { %2176 = vsyncadd (%p1898_p12), %s1547_s17, 4294967040  ;;  %p19_p7 = scmp.ge.s32.totalorder %s2306_s15, 4   ;;  %s2507_s18 = smov %s2183_s19 }
 0x354   : > { %s2508_s19 = smov %s2187_s20  ;;  %s2509_s20 = smov %s2322_s27 }
 0x355   : > { %s2510_s21 = smov %s2306_s15  ;;  %21 = sbr.rel (!%p19_p7) target bundleno = 6 (0x6), region = 98 }
 0x35a   :  { %1552 = vsyncpa [#allocation4], 1 }
 0x35b   :  { %1554 = vsyncpa [#allocation4 + $0x1], 1 }
 0x35c   :  { %1555 = vsyncpa [#allocation7], 1 }
 0x35d   :  { %1556 = vsyncpa [#allocation5], 1 }
 0x35e   :  { %1558 = vsyncpa [#allocation5 + $0x1], 1 }

</bundles_post_ra>
